<compile_context>
chip_gen: v7x
topology: tpu7x:2x2x1
jax: 0.10.0
libtpu: 0.0.40
codegen_flags: <defaults>
</compile_context>

<pallas_src>
import functools

import jax
import jax.numpy as jnp
from jax import lax
from jax.experimental import pallas as pl
from jax.experimental.pallas import tpu as pltpu


# ----------------------------------------------------------------------------
# Fused Pallas kernel
# ----------------------------------------------------------------------------
def _causal_shift(x, shift, T):
    """x: (B*T, C).  y[b*T + t] = x[b*T + t - shift] if t >= shift else 0."""
    BT, C = x.shape
    if shift == 0:
        return x
    if shift >= T:
        return jnp.zeros_like(x)
    zeros = jnp.zeros((shift, C), x.dtype)
    rolled = jnp.concatenate([zeros, x[: BT - shift, :]], axis=0)
    # zero rows whose in-window time index t < shift (also removes the
    # cross-batch leakage introduced by flattening B and T together)
    t = lax.broadcasted_iota(jnp.int32, (BT, C), 0) % T
    return jnp.where(t >= shift, rolled, jnp.zeros_like(rolled))


def _tcn_fused_kernel(x_ref, *rest, dilations, has_downsample, kernel_size, T):
    refs = list(rest)
    o_ref = refs.pop()                  # outputs follow inputs
    B = o_ref.shape[0]
    BT = x_ref.shape[0]
    it = iter(refs)

    def dot_bf16(a_f32, w_ref):
        return jnp.dot(a_f32.astype(jnp.bfloat16), w_ref[...],
                       preferred_element_type=jnp.float32)

    def causal_conv(inp, w_refs, b_ref, d):
        out = b_ref[...].astype(jnp.float32)            # (1, Cout) broadcasts
        for k, w_ref in enumerate(w_refs):
            s = (kernel_size - 1 - k) * d
            out = out + dot_bf16(_causal_shift(inp, s, T), w_ref)
        return out

    h = x_ref[...].astype(jnp.float32)                  # (B*T, C_in)
    for li, d in enumerate(dilations):
        w1 = [next(it) for _ in range(kernel_size)]
        b1 = next(it)
        w2 = [next(it) for _ in range(kernel_size)]
        b2 = next(it)
        h1 = jnp.maximum(causal_conv(h, w1, b1, d), 0.0)   # conv1+chomp+relu(+dropout=id)
        h2 = jnp.maximum(causal_conv(h1, w2, b2, d), 0.0)  # conv2+chomp+relu(+dropout=id)
        if has_downsample[li]:
            wd = next(it)
            bd = next(it)
            res = dot_bf16(h, wd) + bd[...]
        else:
            res = h
        h = jnp.maximum(h2 + res, 0.0)

    fc_w = next(it)
    fc_b = next(it)
    # pick the last time step of every batch element:  sel[b, b*T + (T-1)] = 1
    bi = lax.broadcasted_iota(jnp.int32, (B, BT), 0)
    ji = lax.broadcasted_iota(jnp.int32, (B, BT), 1)
    sel = (ji == bi * T + (T - 1)).astype(jnp.bfloat16)
    h_last = jnp.dot(sel, h.astype(jnp.bfloat16), preferred_element_type=jnp.float32)
    out = dot_bf16(h_last, fc_w) + fc_b[...]
    o_ref[...] = out.astype(o_ref.dtype)


def tcn_forward(x, prepared, n_features, predict_time_steps):
    """x: (B, window, n_features) -- same tensor the PyTorch forward receives
    (it permutes to NCL; we flatten to (B*T, C) inside the kernel).
    Returns (predict_time_steps, B, n_features), matching the PyTorch module."""
    B, T, F = x.shape
    BT = B * T
    x_flat = x.reshape(BT, F).astype(jnp.float32)

    args = [x_flat]
    for lp in prepared["layers"]:
        args += list(lp["w1"]) + [lp["b1"]] + list(lp["w2"]) + [lp["b2"]]
        if lp["wd"] is not None:
            args += [lp["wd"], lp["bd"]]
    args += [prepared["fc_w"], prepared["fc_b"]]

    O = n_features * predict_time_steps
    in_specs = [pl.BlockSpec(a.shape, lambda i: (0, 0)) for a in args]

    kernel = functools.partial(
        _tcn_fused_kernel,
        dilations=tuple(lp["dilation"] for lp in prepared["layers"]),
        has_downsample=tuple(lp["wd"] is not None for lp in prepared["layers"]),
        kernel_size=prepared["kernel_size"],
        T=T,
    )

    out = pl.pallas_call(
        kernel,
        out_shape=jax.ShapeDtypeStruct((B, O), jnp.float32),
        grid=(1,),                                       # single fused step
        in_specs=in_specs,
        out_specs=pl.BlockSpec((B, O), lambda i: (0, 0)),
        compiler_params=pltpu.CompilerParams(dimension_semantics=("arbitrary",)),
    )(*args)

    out = out.reshape(B, predict_time_steps, n_features)
    return jnp.transpose(out, (1, 0, 2))                 # (P, B, F) as in PyTorch


# ----------------------------------------------------------------------------
# Parameter setup (deterministic, synthetic) + one-time layout preparation
# ----------------------------------------------------------------------------
def init_params(key, n_features, num_channels, kernel_size, predict_time_steps):
    """Torch-layout parameters; weight_norm reparam (w = g*v/||v||) applied here."""
    def weight_normed(kk, out_ch, in_ch):
        v = jax.random.normal(kk, (out_ch, in_ch, kernel_size), jnp.float32) * 0.01
        g = jnp.ones((out_ch, 1, 1), jnp.float32)
        norm = jnp.sqrt(jnp.sum(v * v, axis=(1, 2), keepdims=True))
        return g * v / norm

    layers = []
    in_ch = n_features
    for i, out_ch in enumerate(num_channels):
        k = jax.random.fold_in(key, i)
        k1, k2, k3, k4, k5, k6 = jax.random.split(k, 6)
        w1 = weight_normed(k1, out_ch, in_ch)            # (out, in, K)
        w2 = weight_normed(k2, out_ch, out_ch)
        bnd1 = 1.0 / (in_ch * kernel_size) ** 0.5
        bnd2 = 1.0 / (out_ch * kernel_size) ** 0.5
        b1 = jax.random.uniform(k3, (out_ch,), jnp.float32, -bnd1, bnd1)
        b2 = jax.random.uniform(k4, (out_ch,), jnp.float32, -bnd2, bnd2)
        if in_ch != out_ch:
            wd = jax.random.normal(k5, (out_ch, in_ch), jnp.float32) * 0.01
            bndd = 1.0 / in_ch ** 0.5
            bd = jax.random.uniform(k6, (out_ch,), jnp.float32, -bndd, bndd)
        else:
            wd, bd = None, None
        layers.append(dict(w1=w1, b1=b1, w2=w2, b2=b2, wd=wd, bd=bd,
                           dilation=2 ** i))
        in_ch = out_ch

    kf = jax.random.fold_in(key, 10_000)
    kw, kb = jax.random.split(kf)
    O = n_features * predict_time_steps
    bndf = 1.0 / in_ch ** 0.5
    fc_w = jax.random.uniform(kw, (O, in_ch), jnp.float32, -bndf, bndf)  # (out, in)
    fc_b = jax.random.uniform(kb, (O,), jnp.float32, -bndf, bndf)
    return layers, (fc_w, fc_b), kernel_size


def prepare_params(layers, fc_params, kernel_size):
    """One-time conversion to kernel layout: per-tap (C_in, C_out) bf16 weights,
    (1, C) f32 biases; hoists all transposes/casts out of the forward path."""
    prep_layers = []
    for p in layers:
        w1_taps = tuple(p["w1"][:, :, k].T.astype(jnp.bfloat16)
                        for k in range(kernel_size))
        w2_taps = tuple(p["w2"][:, :, k].T.astype(jnp.bfloat16)
                        for k in range(kernel_size))
        wd = None if p["wd"] is None else p["wd"].T.astype(jnp.bfloat16)
        bd = None if p["bd"] is None else p["bd"][None, :].astype(jnp.float32)
        prep_layers.append(dict(
            w1=w1_taps, b1=p["b1"][None, :].astype(jnp.float32),
            w2=w2_taps, b2=p["b2"][None, :].astype(jnp.float32),
            wd=wd, bd=bd, dilation=p["dilation"]))
    fc_w, fc_b = fc_params
    return dict(layers=prep_layers,
                fc_w=fc_w.T.astype(jnp.bfloat16),
                fc_b=fc_b[None, :].astype(jnp.float32),
                kernel_size=kernel_size)


# ----------------------------------------------------------------------------
if __name__ == "__main__":
    B = 2                  # batch
    T = 16                 # window length
    n_features = 4
    num_channels = [8, 8]  # layer 0 has a 1x1 downsample (4->8), layer 1 does not
    kernel_size = 2
    predict_time_steps = 1

    key = jax.random.PRNGKey(0)
    kx, kp = jax.random.split(key)
    x = jax.random.normal(kx, (B, T, n_features), jnp.float32)

    layers, fc_params, ksz = init_params(kp, n_features, num_channels,
                                         kernel_size, predict_time_steps)
    prepared = prepare_params(layers, fc_params, ksz)

    out = tcn_forward(x, prepared, n_features, predict_time_steps)
    out = jax.block_until_ready(out)
    assert out.shape == (predict_time_steps, B, n_features), out.shape
    print("KERNEL_OK")
</pallas_src>

<mosaic_0001>
module attributes {stable_mosaic.version = 11 : i64} {
  func.func @_tcn_fused_kernel(%arg0: i32, %arg1: memref<32x4xf32, #tpu.memory_space<vmem>>, %arg2: memref<4x8xbf16, #tpu.memory_space<vmem>>, %arg3: memref<4x8xbf16, #tpu.memory_space<vmem>>, %arg4: memref<1x8xf32, #tpu.memory_space<vmem>>, %arg5: memref<8x8xbf16, #tpu.memory_space<vmem>>, %arg6: memref<8x8xbf16, #tpu.memory_space<vmem>>, %arg7: memref<1x8xf32, #tpu.memory_space<vmem>>, %arg8: memref<4x8xbf16, #tpu.memory_space<vmem>>, %arg9: memref<1x8xf32, #tpu.memory_space<vmem>>, %arg10: memref<8x8xbf16, #tpu.memory_space<vmem>>, %arg11: memref<8x8xbf16, #tpu.memory_space<vmem>>, %arg12: memref<1x8xf32, #tpu.memory_space<vmem>>, %arg13: memref<8x8xbf16, #tpu.memory_space<vmem>>, %arg14: memref<8x8xbf16, #tpu.memory_space<vmem>>, %arg15: memref<1x8xf32, #tpu.memory_space<vmem>>, %arg16: memref<8x4xbf16, #tpu.memory_space<vmem>>, %arg17: memref<1x4xf32, #tpu.memory_space<vmem>>, %arg18: memref<2x4xf32, #tpu.memory_space<vmem>>) attributes {dimension_semantics = [#tpu.dimension_semantics<arbitrary>], iteration_bounds = array<i64: 1>, scalar_prefetch = 0 : i64, scratch_operands = 0 : i64, tpu.core_type = #tpu.core_type<tc>, window_params = [{pipeline_mode = #tpu.pipeline_mode<synchronous>, transform_indices = @transform_0, window_bounds = array<i64: 32, 4>}, {pipeline_mode = #tpu.pipeline_mode<synchronous>, transform_indices = @transform_1, window_bounds = array<i64: 4, 8>}, {pipeline_mode = #tpu.pipeline_mode<synchronous>, transform_indices = @transform_2, window_bounds = array<i64: 4, 8>}, {pipeline_mode = #tpu.pipeline_mode<synchronous>, transform_indices = @transform_3, window_bounds = array<i64: 1, 8>}, {pipeline_mode = #tpu.pipeline_mode<synchronous>, transform_indices = @transform_4, window_bounds = array<i64: 8, 8>}, {pipeline_mode = #tpu.pipeline_mode<synchronous>, transform_indices = @transform_5, window_bounds = array<i64: 8, 8>}, {pipeline_mode = #tpu.pipeline_mode<synchronous>, transform_indices = @transform_6, window_bounds = array<i64: 1, 8>}, {pipeline_mode = #tpu.pipeline_mode<synchronous>, transform_indices = @transform_7, window_bounds = array<i64: 4, 8>}, {pipeline_mode = #tpu.pipeline_mode<synchronous>, transform_indices = @transform_8, window_bounds = array<i64: 1, 8>}, {pipeline_mode = #tpu.pipeline_mode<synchronous>, transform_indices = @transform_9, window_bounds = array<i64: 8, 8>}, {pipeline_mode = #tpu.pipeline_mode<synchronous>, transform_indices = @transform_10, window_bounds = array<i64: 8, 8>}, {pipeline_mode = #tpu.pipeline_mode<synchronous>, transform_indices = @transform_11, window_bounds = array<i64: 1, 8>}, {pipeline_mode = #tpu.pipeline_mode<synchronous>, transform_indices = @transform_12, window_bounds = array<i64: 8, 8>}, {pipeline_mode = #tpu.pipeline_mode<synchronous>, transform_indices = @transform_13, window_bounds = array<i64: 8, 8>}, {pipeline_mode = #tpu.pipeline_mode<synchronous>, transform_indices = @transform_14, window_bounds = array<i64: 1, 8>}, {pipeline_mode = #tpu.pipeline_mode<synchronous>, transform_indices = @transform_15, window_bounds = array<i64: 8, 4>}, {pipeline_mode = #tpu.pipeline_mode<synchronous>, transform_indices = @transform_16, window_bounds = array<i64: 1, 4>}, {pipeline_mode = #tpu.pipeline_mode<synchronous>, transform_indices = @transform_17, window_bounds = array<i64: 2, 4>}]} {
    %c0 = arith.constant 0 : index
    %c0_0 = arith.constant 0 : index
    %0 = vector.load %arg1[%c0, %c0_0] : memref<32x4xf32, #tpu.memory_space<vmem>>, vector<32x4xf32>
    %c0_1 = arith.constant 0 : index
    %c0_2 = arith.constant 0 : index
    %1 = vector.load %arg4[%c0_1, %c0_2] : memref<1x8xf32, #tpu.memory_space<vmem>>, vector<1x8xf32>
    %cst = arith.constant 0.000000e+00 : f32
    %2 = vector.broadcast %cst : f32 to vector<1x4xf32>
    %3 = vector.extract_strided_slice %0 {offsets = [0, 0], sizes = [31, 4], strides = [1, 1]} : vector<32x4xf32> to vector<31x4xf32>
    %4 = tpu.concatenate %2, %3 in 0 : vector<1x4xf32>, vector<31x4xf32> -> vector<32x4xf32>
    %5 = tpu.iota {dimensions = array<i32: 0>} : vector<32x4xi32>
    %c16_i32 = arith.constant 16 : i32
    %c0_i32 = arith.constant 0 : i32
    %6 = arith.cmpi eq, %c16_i32, %c0_i32 : i32
    %c1_i32 = arith.constant 1 : i32
    %7 = arith.select %6, %c1_i32, %c16_i32 : i32
    %8 = vector.broadcast %7 : i32 to vector<32x4xi32>
    %9 = arith.remsi %5, %8 : vector<32x4xi32>
    %c0_i32_3 = arith.constant 0 : i32
    %10 = vector.broadcast %c0_i32_3 : i32 to vector<32x4xi32>
    %11 = arith.cmpi ne, %9, %10 : vector<32x4xi32>
    %c0_i32_4 = arith.constant 0 : i32
    %12 = vector.broadcast %c0_i32_4 : i32 to vector<32x4xi32>
    %13 = arith.cmpi slt, %9, %12 : vector<32x4xi32>
    %c0_i32_5 = arith.constant 0 : i32
    %14 = arith.cmpi slt, %7, %c0_i32_5 : i32
    %15 = vector.broadcast %14 : i1 to vector<32x4xi1>
    %16 = vector.broadcast %15 : vector<32x4xi1> to vector<32x4xi1>
    %17 = arith.xori %13, %16 : vector<32x4xi1>
    %18 = arith.andi %17, %11 : vector<32x4xi1>
    %19 = vector.broadcast %7 : i32 to vector<32x4xi32>
    %20 = arith.addi %9, %19 : vector<32x4xi32>
    %21 = arith.select %18, %20, %9 : vector<32x4xi1>, vector<32x4xi32>
    %c1_i32_6 = arith.constant 1 : i32
    %22 = vector.broadcast %c1_i32_6 : i32 to vector<32x4xi32>
    %23 = arith.cmpi sge, %21, %22 : vector<32x4xi32>
    %cst_7 = arith.constant 0.000000e+00 : f32
    %24 = vector.broadcast %cst_7 : f32 to vector<32x4xf32>
    %25 = arith.select %23, %4, %24 : vector<32x4xi1>, vector<32x4xf32>
    %26 = arith.truncf %25 : vector<32x4xf32> to vector<32x4xbf16>
    %c0_8 = arith.constant 0 : index
    %c0_9 = arith.constant 0 : index
    %27 = vector.load %arg2[%c0_8, %c0_9] : memref<4x8xbf16, #tpu.memory_space<vmem>>, vector<4x8xbf16>
    %cst_10 = arith.constant dense<0.000000e+00> : vector<32x8xf32>
    %28 = tpu.matmul %26, %27, %cst_10 {dimension_numbers = #tpu.dot_dimension_numbers<[1], [0], [0], [1], [0, 0, 1, 1], [], []>} : vector<32x4xbf16>, vector<4x8xbf16>, vector<32x8xf32> -> vector<32x8xf32>
    %29 = vector.broadcast %1 : vector<1x8xf32> to vector<32x8xf32>
    %30 = arith.addf %29, %28 : vector<32x8xf32>
    %31 = arith.truncf %0 : vector<32x4xf32> to vector<32x4xbf16>
    %c0_11 = arith.constant 0 : index
    %c0_12 = arith.constant 0 : index
    %32 = vector.load %arg3[%c0_11, %c0_12] : memref<4x8xbf16, #tpu.memory_space<vmem>>, vector<4x8xbf16>
    %cst_13 = arith.constant dense<0.000000e+00> : vector<32x8xf32>
    %33 = tpu.matmul %31, %32, %cst_13 {dimension_numbers = #tpu.dot_dimension_numbers<[1], [0], [0], [1], [0, 0, 1, 1], [], []>} : vector<32x4xbf16>, vector<4x8xbf16>, vector<32x8xf32> -> vector<32x8xf32>
    %34 = arith.addf %30, %33 : vector<32x8xf32>
    %cst_14 = arith.constant 0.000000e+00 : f32
    %35 = vector.broadcast %cst_14 : f32 to vector<32x8xf32>
    %36 = arith.maximumf %34, %35 : vector<32x8xf32>
    %c0_15 = arith.constant 0 : index
    %c0_16 = arith.constant 0 : index
    %37 = vector.load %arg7[%c0_15, %c0_16] : memref<1x8xf32, #tpu.memory_space<vmem>>, vector<1x8xf32>
    %cst_17 = arith.constant 0.000000e+00 : f32
    %38 = vector.broadcast %cst_17 : f32 to vector<1x8xf32>
    %39 = vector.extract_strided_slice %36 {offsets = [0, 0], sizes = [31, 8], strides = [1, 1]} : vector<32x8xf32> to vector<31x8xf32>
    %40 = tpu.concatenate %38, %39 in 0 : vector<1x8xf32>, vector<31x8xf32> -> vector<32x8xf32>
    %41 = tpu.iota {dimensions = array<i32: 0>} : vector<32x8xi32>
    %c16_i32_18 = arith.constant 16 : i32
    %c0_i32_19 = arith.constant 0 : i32
    %42 = arith.cmpi eq, %c16_i32_18, %c0_i32_19 : i32
    %c1_i32_20 = arith.constant 1 : i32
    %43 = arith.select %42, %c1_i32_20, %c16_i32_18 : i32
    %44 = vector.broadcast %43 : i32 to vector<32x8xi32>
    %45 = arith.remsi %41, %44 : vector<32x8xi32>
    %c0_i32_21 = arith.constant 0 : i32
    %46 = vector.broadcast %c0_i32_21 : i32 to vector<32x8xi32>
    %47 = arith.cmpi ne, %45, %46 : vector<32x8xi32>
    %c0_i32_22 = arith.constant 0 : i32
    %48 = vector.broadcast %c0_i32_22 : i32 to vector<32x8xi32>
    %49 = arith.cmpi slt, %45, %48 : vector<32x8xi32>
    %c0_i32_23 = arith.constant 0 : i32
    %50 = arith.cmpi slt, %43, %c0_i32_23 : i32
    %51 = vector.broadcast %50 : i1 to vector<32x8xi1>
    %52 = vector.broadcast %51 : vector<32x8xi1> to vector<32x8xi1>
    %53 = arith.xori %49, %52 : vector<32x8xi1>
    %54 = arith.andi %53, %47 : vector<32x8xi1>
    %55 = vector.broadcast %43 : i32 to vector<32x8xi32>
    %56 = arith.addi %45, %55 : vector<32x8xi32>
    %57 = arith.select %54, %56, %45 : vector<32x8xi1>, vector<32x8xi32>
    %c1_i32_24 = arith.constant 1 : i32
    %58 = vector.broadcast %c1_i32_24 : i32 to vector<32x8xi32>
    %59 = arith.cmpi sge, %57, %58 : vector<32x8xi32>
    %cst_25 = arith.constant 0.000000e+00 : f32
    %60 = vector.broadcast %cst_25 : f32 to vector<32x8xf32>
    %61 = arith.select %59, %40, %60 : vector<32x8xi1>, vector<32x8xf32>
    %62 = arith.truncf %61 : vector<32x8xf32> to vector<32x8xbf16>
    %c0_26 = arith.constant 0 : index
    %c0_27 = arith.constant 0 : index
    %63 = vector.load %arg5[%c0_26, %c0_27] : memref<8x8xbf16, #tpu.memory_space<vmem>>, vector<8x8xbf16>
    %cst_28 = arith.constant dense<0.000000e+00> : vector<32x8xf32>
    %64 = tpu.matmul %62, %63, %cst_28 {dimension_numbers = #tpu.dot_dimension_numbers<[1], [0], [0], [1], [0, 0, 1, 1], [], []>} : vector<32x8xbf16>, vector<8x8xbf16>, vector<32x8xf32> -> vector<32x8xf32>
    %65 = vector.broadcast %37 : vector<1x8xf32> to vector<32x8xf32>
    %66 = arith.addf %65, %64 : vector<32x8xf32>
    %67 = arith.truncf %36 : vector<32x8xf32> to vector<32x8xbf16>
    %c0_29 = arith.constant 0 : index
    %c0_30 = arith.constant 0 : index
    %68 = vector.load %arg6[%c0_29, %c0_30] : memref<8x8xbf16, #tpu.memory_space<vmem>>, vector<8x8xbf16>
    %cst_31 = arith.constant dense<0.000000e+00> : vector<32x8xf32>
    %69 = tpu.matmul %67, %68, %cst_31 {dimension_numbers = #tpu.dot_dimension_numbers<[1], [0], [0], [1], [0, 0, 1, 1], [], []>} : vector<32x8xbf16>, vector<8x8xbf16>, vector<32x8xf32> -> vector<32x8xf32>
    %70 = arith.addf %66, %69 : vector<32x8xf32>
    %cst_32 = arith.constant 0.000000e+00 : f32
    %71 = vector.broadcast %cst_32 : f32 to vector<32x8xf32>
    %72 = arith.maximumf %70, %71 : vector<32x8xf32>
    %73 = arith.truncf %0 : vector<32x4xf32> to vector<32x4xbf16>
    %c0_33 = arith.constant 0 : index
    %c0_34 = arith.constant 0 : index
    %74 = vector.load %arg8[%c0_33, %c0_34] : memref<4x8xbf16, #tpu.memory_space<vmem>>, vector<4x8xbf16>
    %cst_35 = arith.constant dense<0.000000e+00> : vector<32x8xf32>
    %75 = tpu.matmul %73, %74, %cst_35 {dimension_numbers = #tpu.dot_dimension_numbers<[1], [0], [0], [1], [0, 0, 1, 1], [], []>} : vector<32x4xbf16>, vector<4x8xbf16>, vector<32x8xf32> -> vector<32x8xf32>
    %c0_36 = arith.constant 0 : index
    %c0_37 = arith.constant 0 : index
    %76 = vector.load %arg9[%c0_36, %c0_37] : memref<1x8xf32, #tpu.memory_space<vmem>>, vector<1x8xf32>
    %77 = vector.broadcast %76 : vector<1x8xf32> to vector<32x8xf32>
    %78 = arith.addf %75, %77 : vector<32x8xf32>
    %79 = arith.addf %72, %78 : vector<32x8xf32>
    %cst_38 = arith.constant 0.000000e+00 : f32
    %80 = vector.broadcast %cst_38 : f32 to vector<32x8xf32>
    %81 = arith.maximumf %79, %80 : vector<32x8xf32>
    %c0_39 = arith.constant 0 : index
    %c0_40 = arith.constant 0 : index
    %82 = vector.load %arg12[%c0_39, %c0_40] : memref<1x8xf32, #tpu.memory_space<vmem>>, vector<1x8xf32>
    %cst_41 = arith.constant 0.000000e+00 : f32
    %83 = vector.broadcast %cst_41 : f32 to vector<2x8xf32>
    %84 = vector.extract_strided_slice %81 {offsets = [0, 0], sizes = [30, 8], strides = [1, 1]} : vector<32x8xf32> to vector<30x8xf32>
    %85 = tpu.concatenate %83, %84 in 0 : vector<2x8xf32>, vector<30x8xf32> -> vector<32x8xf32>
    %86 = tpu.iota {dimensions = array<i32: 0>} : vector<32x8xi32>
    %c16_i32_42 = arith.constant 16 : i32
    %c0_i32_43 = arith.constant 0 : i32
    %87 = arith.cmpi eq, %c16_i32_42, %c0_i32_43 : i32
    %c1_i32_44 = arith.constant 1 : i32
    %88 = arith.select %87, %c1_i32_44, %c16_i32_42 : i32
    %89 = vector.broadcast %88 : i32 to vector<32x8xi32>
    %90 = arith.remsi %86, %89 : vector<32x8xi32>
    %c0_i32_45 = arith.constant 0 : i32
    %91 = vector.broadcast %c0_i32_45 : i32 to vector<32x8xi32>
    %92 = arith.cmpi ne, %90, %91 : vector<32x8xi32>
    %c0_i32_46 = arith.constant 0 : i32
    %93 = vector.broadcast %c0_i32_46 : i32 to vector<32x8xi32>
    %94 = arith.cmpi slt, %90, %93 : vector<32x8xi32>
    %c0_i32_47 = arith.constant 0 : i32
    %95 = arith.cmpi slt, %88, %c0_i32_47 : i32
    %96 = vector.broadcast %95 : i1 to vector<32x8xi1>
    %97 = vector.broadcast %96 : vector<32x8xi1> to vector<32x8xi1>
    %98 = arith.xori %94, %97 : vector<32x8xi1>
    %99 = arith.andi %98, %92 : vector<32x8xi1>
    %100 = vector.broadcast %88 : i32 to vector<32x8xi32>
    %101 = arith.addi %90, %100 : vector<32x8xi32>
    %102 = arith.select %99, %101, %90 : vector<32x8xi1>, vector<32x8xi32>
    %c2_i32 = arith.constant 2 : i32
    %103 = vector.broadcast %c2_i32 : i32 to vector<32x8xi32>
    %104 = arith.cmpi sge, %102, %103 : vector<32x8xi32>
    %cst_48 = arith.constant 0.000000e+00 : f32
    %105 = vector.broadcast %cst_48 : f32 to vector<32x8xf32>
    %106 = arith.select %104, %85, %105 : vector<32x8xi1>, vector<32x8xf32>
    %107 = arith.truncf %106 : vector<32x8xf32> to vector<32x8xbf16>
    %c0_49 = arith.constant 0 : index
    %c0_50 = arith.constant 0 : index
    %108 = vector.load %arg10[%c0_49, %c0_50] : memref<8x8xbf16, #tpu.memory_space<vmem>>, vector<8x8xbf16>
    %cst_51 = arith.constant dense<0.000000e+00> : vector<32x8xf32>
    %109 = tpu.matmul %107, %108, %cst_51 {dimension_numbers = #tpu.dot_dimension_numbers<[1], [0], [0], [1], [0, 0, 1, 1], [], []>} : vector<32x8xbf16>, vector<8x8xbf16>, vector<32x8xf32> -> vector<32x8xf32>
    %110 = vector.broadcast %82 : vector<1x8xf32> to vector<32x8xf32>
    %111 = arith.addf %110, %109 : vector<32x8xf32>
    %112 = arith.truncf %81 : vector<32x8xf32> to vector<32x8xbf16>
    %c0_52 = arith.constant 0 : index
    %c0_53 = arith.constant 0 : index
    %113 = vector.load %arg11[%c0_52, %c0_53] : memref<8x8xbf16, #tpu.memory_space<vmem>>, vector<8x8xbf16>
    %cst_54 = arith.constant dense<0.000000e+00> : vector<32x8xf32>
    %114 = tpu.matmul %112, %113, %cst_54 {dimension_numbers = #tpu.dot_dimension_numbers<[1], [0], [0], [1], [0, 0, 1, 1], [], []>} : vector<32x8xbf16>, vector<8x8xbf16>, vector<32x8xf32> -> vector<32x8xf32>
    %115 = arith.addf %111, %114 : vector<32x8xf32>
    %cst_55 = arith.constant 0.000000e+00 : f32
    %116 = vector.broadcast %cst_55 : f32 to vector<32x8xf32>
    %117 = arith.maximumf %115, %116 : vector<32x8xf32>
    %c0_56 = arith.constant 0 : index
    %c0_57 = arith.constant 0 : index
    %118 = vector.load %arg15[%c0_56, %c0_57] : memref<1x8xf32, #tpu.memory_space<vmem>>, vector<1x8xf32>
    %cst_58 = arith.constant 0.000000e+00 : f32
    %119 = vector.broadcast %cst_58 : f32 to vector<2x8xf32>
    %120 = vector.extract_strided_slice %117 {offsets = [0, 0], sizes = [30, 8], strides = [1, 1]} : vector<32x8xf32> to vector<30x8xf32>
    %121 = tpu.concatenate %119, %120 in 0 : vector<2x8xf32>, vector<30x8xf32> -> vector<32x8xf32>
    %122 = tpu.iota {dimensions = array<i32: 0>} : vector<32x8xi32>
    %c16_i32_59 = arith.constant 16 : i32
    %c0_i32_60 = arith.constant 0 : i32
    %123 = arith.cmpi eq, %c16_i32_59, %c0_i32_60 : i32
    %c1_i32_61 = arith.constant 1 : i32
    %124 = arith.select %123, %c1_i32_61, %c16_i32_59 : i32
    %125 = vector.broadcast %124 : i32 to vector<32x8xi32>
    %126 = arith.remsi %122, %125 : vector<32x8xi32>
    %c0_i32_62 = arith.constant 0 : i32
    %127 = vector.broadcast %c0_i32_62 : i32 to vector<32x8xi32>
    %128 = arith.cmpi ne, %126, %127 : vector<32x8xi32>
    %c0_i32_63 = arith.constant 0 : i32
    %129 = vector.broadcast %c0_i32_63 : i32 to vector<32x8xi32>
    %130 = arith.cmpi slt, %126, %129 : vector<32x8xi32>
    %c0_i32_64 = arith.constant 0 : i32
    %131 = arith.cmpi slt, %124, %c0_i32_64 : i32
    %132 = vector.broadcast %131 : i1 to vector<32x8xi1>
    %133 = vector.broadcast %132 : vector<32x8xi1> to vector<32x8xi1>
    %134 = arith.xori %130, %133 : vector<32x8xi1>
    %135 = arith.andi %134, %128 : vector<32x8xi1>
    %136 = vector.broadcast %124 : i32 to vector<32x8xi32>
    %137 = arith.addi %126, %136 : vector<32x8xi32>
    %138 = arith.select %135, %137, %126 : vector<32x8xi1>, vector<32x8xi32>
    %c2_i32_65 = arith.constant 2 : i32
    %139 = vector.broadcast %c2_i32_65 : i32 to vector<32x8xi32>
    %140 = arith.cmpi sge, %138, %139 : vector<32x8xi32>
    %cst_66 = arith.constant 0.000000e+00 : f32
    %141 = vector.broadcast %cst_66 : f32 to vector<32x8xf32>
    %142 = arith.select %140, %121, %141 : vector<32x8xi1>, vector<32x8xf32>
    %143 = arith.truncf %142 : vector<32x8xf32> to vector<32x8xbf16>
    %c0_67 = arith.constant 0 : index
    %c0_68 = arith.constant 0 : index
    %144 = vector.load %arg13[%c0_67, %c0_68] : memref<8x8xbf16, #tpu.memory_space<vmem>>, vector<8x8xbf16>
    %cst_69 = arith.constant dense<0.000000e+00> : vector<32x8xf32>
    %145 = tpu.matmul %143, %144, %cst_69 {dimension_numbers = #tpu.dot_dimension_numbers<[1], [0], [0], [1], [0, 0, 1, 1], [], []>} : vector<32x8xbf16>, vector<8x8xbf16>, vector<32x8xf32> -> vector<32x8xf32>
    %146 = vector.broadcast %118 : vector<1x8xf32> to vector<32x8xf32>
    %147 = arith.addf %146, %145 : vector<32x8xf32>
    %148 = arith.truncf %117 : vector<32x8xf32> to vector<32x8xbf16>
    %c0_70 = arith.constant 0 : index
    %c0_71 = arith.constant 0 : index
    %149 = vector.load %arg14[%c0_70, %c0_71] : memref<8x8xbf16, #tpu.memory_space<vmem>>, vector<8x8xbf16>
    %cst_72 = arith.constant dense<0.000000e+00> : vector<32x8xf32>
    %150 = tpu.matmul %148, %149, %cst_72 {dimension_numbers = #tpu.dot_dimension_numbers<[1], [0], [0], [1], [0, 0, 1, 1], [], []>} : vector<32x8xbf16>, vector<8x8xbf16>, vector<32x8xf32> -> vector<32x8xf32>
    %151 = arith.addf %147, %150 : vector<32x8xf32>
    %cst_73 = arith.constant 0.000000e+00 : f32
    %152 = vector.broadcast %cst_73 : f32 to vector<32x8xf32>
    %153 = arith.maximumf %151, %152 : vector<32x8xf32>
    %154 = arith.addf %153, %81 : vector<32x8xf32>
    %cst_74 = arith.constant 0.000000e+00 : f32
    %155 = vector.broadcast %cst_74 : f32 to vector<32x8xf32>
    %156 = arith.maximumf %154, %155 : vector<32x8xf32>
    %157 = tpu.iota {dimensions = array<i32: 0>} : vector<2x32xi32>
    %158 = tpu.iota {dimensions = array<i32: 1>} : vector<2x32xi32>
    %c16_i32_75 = arith.constant 16 : i32
    %159 = vector.broadcast %c16_i32_75 : i32 to vector<2x32xi32>
    %160 = arith.muli %157, %159 : vector<2x32xi32>
    %c15_i32 = arith.constant 15 : i32
    %161 = vector.broadcast %c15_i32 : i32 to vector<2x32xi32>
    %162 = arith.addi %160, %161 : vector<2x32xi32>
    %163 = arith.cmpi eq, %158, %162 : vector<2x32xi32>
    %164 = arith.extui %163 : vector<2x32xi1> to vector<2x32xi32>
    %165 = arith.sitofp %164 : vector<2x32xi32> to vector<2x32xf32>
    %166 = arith.truncf %165 : vector<2x32xf32> to vector<2x32xbf16>
    %167 = arith.truncf %156 : vector<32x8xf32> to vector<32x8xbf16>
    %cst_76 = arith.constant dense<0.000000e+00> : vector<2x8xf32>
    %168 = tpu.matmul %166, %167, %cst_76 {dimension_numbers = #tpu.dot_dimension_numbers<[1], [0], [0], [1], [0, 0, 1, 1], [], []>} : vector<2x32xbf16>, vector<32x8xbf16>, vector<2x8xf32> -> vector<2x8xf32>
    %169 = arith.truncf %168 : vector<2x8xf32> to vector<2x8xbf16>
    %c0_77 = arith.constant 0 : index
    %c0_78 = arith.constant 0 : index
    %170 = vector.load %arg16[%c0_77, %c0_78] : memref<8x4xbf16, #tpu.memory_space<vmem>>, vector<8x4xbf16>
    %cst_79 = arith.constant dense<0.000000e+00> : vector<2x4xf32>
    %171 = tpu.matmul %169, %170, %cst_79 {dimension_numbers = #tpu.dot_dimension_numbers<[1], [0], [0], [1], [0, 0, 1, 1], [], []>} : vector<2x8xbf16>, vector<8x4xbf16>, vector<2x4xf32> -> vector<2x4xf32>
    %c0_80 = arith.constant 0 : index
    %c0_81 = arith.constant 0 : index
    %172 = vector.load %arg17[%c0_80, %c0_81] : memref<1x4xf32, #tpu.memory_space<vmem>>, vector<1x4xf32>
    %173 = vector.broadcast %172 : vector<1x4xf32> to vector<2x4xf32>
    %174 = arith.addf %171, %173 : vector<2x4xf32>
    %c0_82 = arith.constant 0 : index
    %c0_83 = arith.constant 0 : index
    %175 = vector.load %arg18[%c0_82, %c0_83] : memref<2x4xf32, #tpu.memory_space<vmem>>, vector<2x4xf32>
    tpu.vector_store %arg18[%c0_82, %c0_83], %174 {strides = array<i32>} : memref<2x4xf32, #tpu.memory_space<vmem>>, vector<2x4xf32>,
    return
  }
  func.func @transform_0(%arg0: i32) -> (i32, i32) {
    %c0_i32 = arith.constant 0 : i32
    %c0_i32_0 = arith.constant 0 : i32
    %c0_i32_1 = arith.constant 0 : i32
    return %c0_i32, %c0_i32_0 : i32, i32
  }
  func.func @transform_1(%arg0: i32) -> (i32, i32) {
    %c0_i32 = arith.constant 0 : i32
    %c0_i32_0 = arith.constant 0 : i32
    %c0_i32_1 = arith.constant 0 : i32
    return %c0_i32, %c0_i32_0 : i32, i32
  }
  func.func @transform_2(%arg0: i32) -> (i32, i32) {
    %c0_i32 = arith.constant 0 : i32
    %c0_i32_0 = arith.constant 0 : i32
    %c0_i32_1 = arith.constant 0 : i32
    return %c0_i32, %c0_i32_0 : i32, i32
  }
  func.func @transform_3(%arg0: i32) -> (i32, i32) {
    %c0_i32 = arith.constant 0 : i32
    %c0_i32_0 = arith.constant 0 : i32
    %c0_i32_1 = arith.constant 0 : i32
    return %c0_i32, %c0_i32_0 : i32, i32
  }
  func.func @transform_4(%arg0: i32) -> (i32, i32) {
    %c0_i32 = arith.constant 0 : i32
    %c0_i32_0 = arith.constant 0 : i32
    %c0_i32_1 = arith.constant 0 : i32
    return %c0_i32, %c0_i32_0 : i32, i32
  }
  func.func @transform_5(%arg0: i32) -> (i32, i32) {
    %c0_i32 = arith.constant 0 : i32
    %c0_i32_0 = arith.constant 0 : i32
    %c0_i32_1 = arith.constant 0 : i32
    return %c0_i32, %c0_i32_0 : i32, i32
  }
  func.func @transform_6(%arg0: i32) -> (i32, i32) {
    %c0_i32 = arith.constant 0 : i32
    %c0_i32_0 = arith.constant 0 : i32
    %c0_i32_1 = arith.constant 0 : i32
    return %c0_i32, %c0_i32_0 : i32, i32
  }
  func.func @transform_7(%arg0: i32) -> (i32, i32) {
    %c0_i32 = arith.constant 0 : i32
    %c0_i32_0 = arith.constant 0 : i32
    %c0_i32_1 = arith.constant 0 : i32
    return %c0_i32, %c0_i32_0 : i32, i32
  }
  func.func @transform_8(%arg0: i32) -> (i32, i32) {
    %c0_i32 = arith.constant 0 : i32
    %c0_i32_0 = arith.constant 0 : i32
    %c0_i32_1 = arith.constant 0 : i32
    return %c0_i32, %c0_i32_0 : i32, i32
  }
  func.func @transform_9(%arg0: i32) -> (i32, i32) {
    %c0_i32 = arith.constant 0 : i32
    %c0_i32_0 = arith.constant 0 : i32
    %c0_i32_1 = arith.constant 0 : i32
    return %c0_i32, %c0_i32_0 : i32, i32
  }
  func.func @transform_10(%arg0: i32) -> (i32, i32) {
    %c0_i32 = arith.constant 0 : i32
    %c0_i32_0 = arith.constant 0 : i32
    %c0_i32_1 = arith.constant 0 : i32
    return %c0_i32, %c0_i32_0 : i32, i32
  }
  func.func @transform_11(%arg0: i32) -> (i32, i32) {
    %c0_i32 = arith.constant 0 : i32
    %c0_i32_0 = arith.constant 0 : i32
    %c0_i32_1 = arith.constant 0 : i32
    return %c0_i32, %c0_i32_0 : i32, i32
  }
  func.func @transform_12(%arg0: i32) -> (i32, i32) {
    %c0_i32 = arith.constant 0 : i32
    %c0_i32_0 = arith.constant 0 : i32
    %c0_i32_1 = arith.constant 0 : i32
    return %c0_i32, %c0_i32_0 : i32, i32
  }
  func.func @transform_13(%arg0: i32) -> (i32, i32) {
    %c0_i32 = arith.constant 0 : i32
    %c0_i32_0 = arith.constant 0 : i32
    %c0_i32_1 = arith.constant 0 : i32
    return %c0_i32, %c0_i32_0 : i32, i32
  }
  func.func @transform_14(%arg0: i32) -> (i32, i32) {
    %c0_i32 = arith.constant 0 : i32
    %c0_i32_0 = arith.constant 0 : i32
    %c0_i32_1 = arith.constant 0 : i32
    return %c0_i32, %c0_i32_0 : i32, i32
  }
  func.func @transform_15(%arg0: i32) -> (i32, i32) {
    %c0_i32 = arith.constant 0 : i32
    %c0_i32_0 = arith.constant 0 : i32
    %c0_i32_1 = arith.constant 0 : i32
    return %c0_i32, %c0_i32_0 : i32, i32
  }
  func.func @transform_16(%arg0: i32) -> (i32, i32) {
    %c0_i32 = arith.constant 0 : i32
    %c0_i32_0 = arith.constant 0 : i32
    %c0_i32_1 = arith.constant 0 : i32
    return %c0_i32, %c0_i32_0 : i32, i32
  }
  func.func @transform_17(%arg0: i32) -> (i32, i32) {
    %c0_i32 = arith.constant 0 : i32
    %c0_i32_0 = arith.constant 0 : i32
    %c0_i32_1 = arith.constant 0 : i32
    return %c0_i32, %c0_i32_0 : i32, i32
  }
}

</mosaic_0001>

<bundles_post_ra>
// kernel: tpu_custom_call.1
= control target key start
LH: loop header
LB: loop body
LE: loop exit
PB: predicated region body
PF: predicated region fallthrough
CT: control target
= control target key end

     0   :  { %s1458_s0 = inlined_call_operand.vmem [shape: f32[32,4], index: 0, kind: input, shape index: {}]   ;;  %s1459_s1 = inlined_call_operand.vmem [shape: bf16[4,8], index: 1, kind: input, shape index: {}]   ;;  %s1460_s2 = inlined_call_operand.vmem [shape: bf16[4,8], index: 2, kind: input, shape index: {}]   ;;  %s1461_s3 = inlined_call_operand.vmem [shape: f32[1,8], index: 3, kind: input, shape index: {}]   ;;  %s1462_s4 = inlined_call_operand.vmem [shape: bf16[8,8], index: 4, kind: input, shape index: {}]   ;;  %s1463_s5 = inlined_call_operand.vmem [shape: bf16[8,8], index: 5, kind: input, shape index: {}]   ;;  %s1464_s6 = inlined_call_operand.vmem [shape: f32[1,8], index: 6, kind: input, shape index: {}]   ;;  %s1465_s7 = inlined_call_operand.vmem [shape: bf16[4,8], index: 7, kind: input, shape index: {}]   ;;  %s1466_s8 = inlined_call_operand.vmem [shape: f32[1,8], index: 8, kind: input, shape index: {}]   ;;  %s1467_s9 = inlined_call_operand.vmem [shape: bf16[8,8], index: 9, kind: input, shape index: {}]   ;;  %s1468_s10 = inlined_call_operand.vmem [shape: bf16[8,8], index: 10, kind: input, shape index: {}]   ;;  %s1469_s11 = inlined_call_operand.vmem [shape: f32[1,8], index: 11, kind: input, shape index: {}]   ;;  %s1470_s12 = inlined_call_operand.vmem [shape: bf16[8,8], index: 12, kind: input, shape index: {}]   ;;  %s1471_s13 = inlined_call_operand.vmem [shape: bf16[8,8], index: 13, kind: input, shape index: {}]   ;;  %s1472_s14 = inlined_call_operand.vmem [shape: f32[1,8], index: 14, kind: input, shape index: {}]   ;;  %s1473_s15 = inlined_call_operand.vmem [shape: bf16[8,4], index: 15, kind: input, shape index: {}]   ;;  %s1474_s16 = inlined_call_operand.vmem [shape: f32[1,4], index: 16, kind: input, shape index: {}]   ;;  %s1475_s17 = inlined_call_operand.hbm [shape: f32[2,4], index: 17, kind: output, shape index: {}]  }
   0x1   :  { %1477 = sst [smem:[#allocation5_spill]] %s1458_s0 }
   0x2   :  { %1478 = sst [smem:[#allocation6_spill]] %s1459_s1 }
   0x3   :  { %s1479_s26 = sld [smem:[#allocation6_spill]]  ;;  %vm151_vm0 = vcmask 1041408   ;;  %s1480_s29 = sld [smem:[#allocation5_spill]]  ;;  %v80_v3 = vlaneseq  ;;  %vm67_vm1 = vcmask 1040384   ;;  %v216_v10 = vld [vmem:[%s1460_s2] sm:$0x3] }
   0x5   :  { %v1279_v9 = vshrl.u32 %v80_v3, 7 }
   0x9   :  { %v143_v0 = vld [vmem:[%s1479_s26] sm:$0x3]  ;;  %v59_v2 = vld [vmem:[%s1480_s29 + $0x8] sm:$0xff]  ;;  %v60_v7 = vld [vmem:[%s1480_s29 + $0x10] sm:$0xff] }
   0xa   :  { %v58_v1 = vld [vmem:[%s1480_s29] sm:$0xff]  ;;  %1132 = vmatprep.subr.msk.bf16.mxu0 %vm151_vm0, %v143_v0  ;;  %v153_v4 = vsel %vm151_vm0, %v143_v0, 0  ;;  %v69_v6 = vrot.slane %v59_v2, 7  ;;  %v61_v8 = vld [vmem:[%s1480_s29 + $0x18] sm:$0xff]  ;;  %v71_v11 = vrot.slane %v60_v7, 7 }
   0xb   :  { %v68_v5 = vrot.slane %v58_v1, 7  ;;  %1033 = vmatpush3.bf16.msra.mxu0 %v153_v4 }
   0xc   :  { %1133 = vmatprep.subr.msk.bf16.mxu0 %vm151_vm0, %v216_v10 }
   0xd   :  { %22 = vsyncpa [#allocation3], 0  ;;  %v79_v12 = vsel %vm67_vm1, 0.0, %v68_v5  ;;  %v89_v13 = vand.u32 15, %v1279_v9  ;;  %v73_v14 = vrot.slane %v61_v8, 7  ;;  %v70_v15 = vsel %vm67_vm1, %v68_v5, %v69_v6  ;;  %s1170_s22 = smov [#allocation2]  }
   0xe   :  { %v1289_v16 = vadd.s32 16, %v1279_v9  ;;  %vm144_vm3 = vcmask 31744   ;;  %v72_v19 = vsel %vm67_vm1, %v69_v6, %v71_v11  ;;  %v214_v25 = vpack.c.bf16 %v59_v2, %v58_v1  ;;  %v306_v29 = vld [vmem:[%s1462_s4] sm:$0xf]  ;;  %s965_s2 = sshll.u32 %s1170_s22, 4  ;;  %s966_s2 = int_to_ptr.vmem [resolvable:$true] %s965_s2 }
   0xf   :  { %vm1293_vm2 = vcmp.ge.s32.totalorder %v89_v13, 1  ;;  %v74_v22 = vsel %vm67_vm1, %v71_v11, %v73_v14  ;;  %v224_v27 = vsel %vm151_vm0, %v216_v10, 0  ;;  %v215_v28 = vpack.c.bf16 %v61_v8, %v60_v7  ;;  %v379_v31 = vld [vmem:[%s1463_s5] sm:$0xf]  ;;  %s1144_s23 = scalar_lea.vmem %s966_s2, 32  ;;  %p1149_p1 = scmp.lt.s32.totalorder %s966_s2, %s966_s2 }
  0x10   :  { %v137_v18 = vsel %vm1293_vm2, %v79_v12, 0.0  ;;  %v103_v20 = vand.u32 15, %v1289_v16  ;;  %vm314_vm5 = vcmask 1043456   ;;  %v446_v32 = vld [vmem:[%s1465_s7] sm:$0x3]  ;;  %vm307_vm6 = vcmask 64512   ;;  %p1145_p0 = scmp.ne.s32.totalorder %s966_s2, %s1144_s23  ;;  %p1150_p2 = scmp.lt.s32.totalorder %s1144_s23, %s1144_s23 }
  0x11   :  { %v141_v21 = vpack.c.bf16 %v70_v15, %v137_v18  ;;  %1134 = vmatprep.subr.msk.bf16.mxu1 %vm314_vm5, %v306_v29  ;;  %v316_v30 = vsel %vm314_vm5, %v306_v29, 0  ;;  %v455_v33 = vsel %vm151_vm0, %v446_v32, 0  ;;  %v975_v34 = vld [vmem:[%s1461_s3] ss:$0 sm:$0xff]  ;;  %v387_v61 = vsel %vm314_vm5, %v379_v31, 0 }
  0x12   :  { %vm1304_vm4 = vcmp.ge.s32.totalorder %v103_v20, 1  ;;  %1045 = vmatpush3.bf16.msra.mxu1 %v316_v30  ;;  %v541_v2 = vld [vmem:[%s1467_s9] sm:$0xf]  ;;  %vm1370_vm7 = vcmp.ge.s32.totalorder %v89_v13, 2  ;;  %vm1380_vm8 = vcmp.ge.s32.totalorder %v103_v20, 2  ;;  %vm1169_vm10 = vmmov 0   ;;  %p1151_p3 = por %p1150_p2, %p1149_p1 }
  0x13   :  { %1034 = vmatprep.mubr.msk.bf16.mxu0 %vm144_vm3, %v141_v21  ;;  %v139_v24 = vsel %vm1304_vm4, %v72_v19, 0.0  ;;  %1135 = vmatprep.subr.msk.bf16.mxu1 %vm314_vm5, %v379_v31  ;;  %v549_v4 = vsel %vm314_vm5, %v541_v2, 0  ;;  %v612_v5 = vld [vmem:[%s1468_s10] sm:$0xf]  ;;  %vm858_vm11 = vcmask 261120   ;;  %vm957_vm12 = vcmask 25600  }
  0x14   :  { %v142_v26 = vpack.c.bf16 %v74_v22, %v139_v24  ;;  %v983_v6 = vld [vmem:[%s1466_s8] ss:$0 sm:$0xff]  ;;  %p1152_p4 = pnand %p1151_p3, %p1145_p0 }
  0x15   :  { %v980_v7 = vld [vmem:[%s1464_s6] ss:$0 sm:$0xff] }
  0x16   :  { %1035 = vmatmul.mubr.msk.bf16.vlgmr.msra.gmra.mrb[0].mxu0 %vm144_vm3, %v142_v26 }
  0x17   :  { %1039 = vmatpush3.bf16.msra.mxu0 %v224_v27  ;;  %1040 = vmatprep.mubr.msk.bf16.mxu0 %vm144_vm3, %v214_v25 }
  0x18   :  { %1136 = vmatprep.subr.msk.bf16.mxu0 %vm151_vm0, %v446_v32 }
  0x22   :  { %1041 = vmatmul.mubr.msk.bf16.vlgmr.msra.gmra.mrb[0].mxu0 %vm144_vm3, %v215_v28 }
  0x23   :  { %1058 = vmatprep.mubr.msk.bf16.mxu0 %vm144_vm3, %v214_v25  ;;  %1057 = vmatpush3.bf16.msra.mxu0 %v455_v33 }
  0x2a   :  { %1059 = vmatmul.mubr.msk.bf16.vlgmr.msra.gmra.mrb[4].mxu0 %vm144_vm3, %v215_v28 }
  0xf5   :  { %v1042_v35 = vpop.f32.mrb[0].mxu0 }
  0xf6   :  { %v1100_v36 = vadd.f32 %v1042_v35, %v975_v34  ;;  %v260_v37 = vpop.f32.mrb[1].mxu0 }
  0xf7   :  { %v1101_v38 = vadd.f32 %v975_v34, %v260_v37  ;;  %v1043_v39 = vpop.f32.mrb[2].mxu0 }
  0xf8   :  { %v281_v40 = vmax.f32 %v1100_v36, 0.0  ;;  %v1102_v41 = vadd.f32 %v1043_v39, %v975_v34  ;;  %v263_v42 = vpop.f32.mrb[3].mxu0 }
  0xf9   :  { %v279_v43 = vmax.f32 %v1101_v38, 0.0  ;;  %v1103_v44 = vadd.f32 %v975_v34, %v263_v42 }
  0xfa   :  { %v282_v45 = vmax.f32 %v1102_v41, 0.0  ;;  %v291_v48 = vrot.slane %v281_v40, 7 }
  0xfb   :  { %v288_v46 = vrot.slane %v279_v43, 7  ;;  %v280_v47 = vmax.f32 %v1103_v44, 0.0 }
  0xfc   :  { %v293_v49 = vrot.slane %v282_v45, 7  ;;  %v378_v50 = vpack.c.bf16 %v282_v45, %v281_v40 }
  0xfd   :  { %v289_v51 = vrot.slane %v280_v47, 7  ;;  %v377_v52 = vpack.c.bf16 %v280_v47, %v279_v43  ;;  %v299_v53 = vsel %vm67_vm1, 0.0, %v288_v46  ;;  %v1060_v62 = vpop.f32.mrb[4].mxu0  ;;  %v620_v47 = vsel %vm314_vm5, %v612_v5, 0 }
  0xfe   :  { %v294_v54 = vsel %vm67_vm1, %v291_v48, %v293_v49  ;;  %v300_v55 = vsel %vm1293_vm2, %v299_v53, 0.0  ;;  %v491_v63 = vpop.f32.mrb[5].mxu0  ;;  %v500_v10 = vadd.f32 %v1060_v62, %v983_v6  ;;  %v988_v53 = vld [vmem:[%s1469_s11] ss:$0 sm:$0xff] }
  0xff   :  { %v292_v56 = vsel %vm67_vm1, %v289_v51, %v291_v48  ;;  %v290_v57 = vsel %vm67_vm1, %v288_v46, %v289_v51  ;;  %v1061_v0 = vpop.f32.mrb[6].mxu0  ;;  %v492_v14 = vadd.f32 %v983_v6, %v491_v63 }
 0x100   :  { %v304_v58 = vpack.c.bf16 %v290_v57, %v300_v55  ;;  %v302_v59 = vsel %vm1304_vm4, %v292_v56, 0.0  ;;  %v494_v1 = vpop.f32.mrb[7].mxu0  ;;  %v503_v25 = vadd.f32 %v1061_v0, %v983_v6 }
 0x101   :  { %v305_v60 = vpack.c.bf16 %v294_v54, %v302_v59  ;;  %v495_v28 = vadd.f32 %v983_v6, %v494_v1 }
 0x102   :  { %1046 = vmatprep.mubr.msk.bf16.mxu1 %vm307_vm6, %v304_v58 }
 0x103   :  { %1047 = vmatmul.mubr.msk.bf16.vlgmr.msra.gmra.mrb[0].mxu1 %vm307_vm6, %v305_v60 }
 0x104   :  { %1051 = vmatpush3.bf16.msra.mxu1 %v387_v61  ;;  %1052 = vmatprep.mubr.msk.bf16.mxu1 %vm307_vm6, %v377_v52  ;;  %v773_v52 = vld [vmem:[%s1471_s13] sm:$0xf] }
 0x105   :  { %1137 = vmatprep.subr.msk.bf16.mxu1 %vm314_vm5, %v541_v2 }
 0x10f   :  { %1053 = vmatmul.mubr.msk.bf16.vlgmr.msra.gmra.mrb[0].mxu1 %vm307_vm6, %v378_v50  ;;  %v702_v50 = vld [vmem:[%s1470_s12] sm:$0xf] }
 0x110   :  { %1063 = vmatpush3.bf16.msra.mxu1 %v549_v4  ;;  %1139 = vmatprep.subr.msk.bf16.mxu0 %vm314_vm5, %v702_v50  ;;  %v710_v51 = vsel %vm314_vm5, %v702_v50, 0 }
 0x111   :  { %1138 = vmatprep.subr.msk.bf16.mxu1 %vm314_vm5, %v612_v5  ;;  %1075 = vmatpush3.bf16.msra.mxu0 %v710_v51 }
 0x112   :  { %1140 = vmatprep.subr.msk.bf16.mxu0 %vm314_vm5, %v773_v52 }
 0x1e2   :  { %v1054_v8 = vpop.f32.mrb[0].mxu1 }
 0x1e3   :  { %v1104_v11 = vadd.f32 %v1054_v8, %v980_v7  ;;  %v423_v12 = vpop.f32.mrb[1].mxu1 }
 0x1e4   :  { %v1105_v15 = vadd.f32 %v980_v7, %v423_v12  ;;  %v1055_v17 = vpop.f32.mrb[2].mxu1 }
 0x1e5   :  { %v444_v18 = vmax.f32 %v1104_v11, 0.0  ;;  %v1106_v19 = vadd.f32 %v1055_v17, %v980_v7  ;;  %v426_v21 = vpop.f32.mrb[3].mxu1 }
 0x1e6   :  { %v442_v22 = vmax.f32 %v1105_v15, 0.0  ;;  %v1107_v23 = vadd.f32 %v980_v7, %v426_v21  ;;  %v781_v21 = vsel %vm314_vm5, %v773_v52, 0 }
 0x1e7   :  { %v508_v24 = vadd.f32 %v500_v10, %v444_v18  ;;  %v445_v26 = vmax.f32 %v1106_v19, 0.0 }
 0x1e8   :  { %v506_v27 = vadd.f32 %v492_v14, %v442_v22  ;;  %v443_v29 = vmax.f32 %v1107_v23, 0.0  ;;  %v850_v22 = vmul.u32 16, %v1279_v9  ;;  %v849_v23 = vand.u32 127, %v80_v3  ;;  %v993_v9 = vld [vmem:[%s1472_s14] ss:$0 sm:$0xff] }
 0x1e9   :  { %v509_v30 = vadd.f32 %v503_v25, %v445_v26  ;;  %v1362_v31 = vmax.f32 %v508_v24, 0.0  ;;  %v1168_v25 = vmov 0.0   ;;  %v903_v26 = vld [vmem:[%s1473_s15] sm:$0xf] }
 0x1ea   :  { %v1364_v32 = vmax.f32 %v506_v27, 0.0  ;;  %v507_v33 = vadd.f32 %v495_v28, %v443_v29  ;;  %v851_v24 = vadd.s32 15, %v850_v22  ;;  %v915_v27 = vsel %vm314_vm5, %v903_v26, 0 }
 0x1eb   :  { %v1366_v34 = vmax.f32 %v509_v30, 0.0  ;;  %v522_v40 = vrot.slane %v1362_v31, 6 }
 0x1ec   :  { %v519_v36 = vrot.slane %v1364_v32, 6  ;;  %v1375_v37 = vmax.f32 %v507_v33, 0.0  ;;  %vm852_vm9 = vcmp.eq.s32.totalorder %v849_v23, %v851_v24 }
 0x1ed   :  { %v524_v38 = vrot.slane %v1366_v34, 6  ;;  %v611_v49 = vpack.c.bf16 %v1366_v34, %v1362_v31  ;;  %v996_v50 = vsel %vm852_vm9, 1.0, %v1168_v25 }
 0x1ee   :  { %v520_v41 = vrot.slane %v1375_v37, 6  ;;  %v530_v13 = vsel %vm151_vm0, 0.0, %v519_v36  ;;  %v610_v48 = vpack.c.bf16 %v1375_v37, %v1364_v32  ;;  %v855_v51 = vpack.c.bf16 %v996_v50, %v996_v50 }
 0x1ef   :  { %v535_v42 = vsel %vm1370_vm7, %v530_v13, 0.0  ;;  %v525_v45 = vsel %vm151_vm0, %v522_v40, %v524_v38 }
 0x1f0   :  { %v523_v43 = vsel %vm151_vm0, %v520_v41, %v522_v40  ;;  %v521_v44 = vsel %vm151_vm0, %v519_v36, %v520_v41 }
 0x1f1   :  { %v539_v16 = vpack.c.bf16 %v521_v44, %v535_v42  ;;  %v537_v20 = vsel %vm1380_vm8, %v523_v43, 0.0 }
 0x1f2   :  { %v540_v46 = vpack.c.bf16 %v525_v45, %v537_v20 }
 0x1f3   :  { %1064 = vmatprep.mubr.msk.bf16.mxu1 %vm307_vm6, %v539_v16 }
 0x1f4   :  { %1065 = vmatmul.mubr.msk.bf16.vlgmr.msra.gmra.mrb[4].mxu1 %vm307_vm6, %v540_v46 }
 0x1f5   :  { %1069 = vmatpush3.bf16.msra.mxu1 %v620_v47  ;;  %1070 = vmatprep.mubr.msk.bf16.mxu1 %vm307_vm6, %v610_v48 }
 0x1f6   :  { %1086 = vmatprep.subr.bf16.mxu1 %v1168_v25 }
 0x200   :  { %1071 = vmatmul.mubr.msk.bf16.vlgmr.msra.gmra.mrb[4].mxu1 %vm307_vm6, %v611_v49 }
 0x201   :  { %1090 = vmatprep.mubr.msk.bf16.mxu1 %vm1169_vm10, %v1168_v25 }
 0x2d3   :  { %v1072_v54 = vpop.f32.mrb[4].mxu1 }
 0x2d4   :  { %v1108_v55 = vadd.f32 %v1072_v54, %v988_v53  ;;  %v656_v56 = vpop.f32.mrb[5].mxu1 }
 0x2d5   :  { %v1109_v57 = vadd.f32 %v988_v53, %v656_v56  ;;  %v1073_v58 = vpop.f32.mrb[6].mxu1 }
 0x2d6   :  { %v677_v59 = vmax.f32 %v1108_v55, 0.0  ;;  %v1110_v60 = vadd.f32 %v1073_v58, %v988_v53  ;;  %v659_v61 = vpop.f32.mrb[7].mxu1 }
 0x2d7   :  { %v675_v62 = vmax.f32 %v1109_v57, 0.0  ;;  %v1111_v63 = vadd.f32 %v988_v53, %v659_v61 }
 0x2d8   :  { %v678_v0 = vmax.f32 %v1110_v60, 0.0  ;;  %v687_v4 = vrot.slane %v677_v59, 6 }
 0x2d9   :  { %v684_v1 = vrot.slane %v675_v62, 6  ;;  %v676_v2 = vmax.f32 %v1111_v63, 0.0 }
 0x2da   :  { %v689_v5 = vrot.slane %v678_v0, 6  ;;  %v772_v6 = vpack.c.bf16 %v678_v0, %v677_v59 }
 0x2db   :  { %v695_v7 = vsel %vm151_vm0, 0.0, %v684_v1  ;;  %v685_v8 = vrot.slane %v676_v2, 6  ;;  %v771_v10 = vpack.c.bf16 %v676_v2, %v675_v62 }
 0x2dc   :  { %v696_v11 = vsel %vm1370_vm7, %v695_v7, 0.0  ;;  %v690_v12 = vsel %vm151_vm0, %v687_v4, %v689_v5 }
 0x2dd   :  { %v686_v14 = vsel %vm151_vm0, %v684_v1, %v685_v8  ;;  %v688_v15 = vsel %vm151_vm0, %v685_v8, %v687_v4 }
 0x2de   :  { %v698_v17 = vsel %vm1380_vm8, %v688_v15, 0.0  ;;  %v700_v18 = vpack.c.bf16 %v686_v14, %v696_v11 }
 0x2df   :  { %v701_v19 = vpack.c.bf16 %v690_v12, %v698_v17 }
 0x2e0   :  { %1076 = vmatprep.mubr.msk.bf16.mxu0 %vm307_vm6, %v700_v18 }
 0x2e1   :  { %1077 = vmatmul.mubr.msk.bf16.vlgmr.msra.gmra.mrb[8].mxu0 %vm307_vm6, %v701_v19 }
 0x2e2   :  { %1081 = vmatpush3.bf16.msra.mxu0 %v781_v21  ;;  %1082 = vmatprep.mubr.msk.bf16.mxu0 %vm307_vm6, %v771_v10 }
 0x2e3   :  { %1094 = vmatprep.subr.bf16.mxu0 %v1168_v25 }
 0x2ed   :  { %1083 = vmatmul.mubr.msk.bf16.vlgmr.msra.gmra.mrb[8].mxu0 %vm307_vm6, %v772_v6 }
 0x2ee   :  { %1096 = vmatprep.mubr.msk.bf16.mxu0 %vm1169_vm10, %v1168_v25  ;;  %1095 = vmatpush3.bf16.msra.mxu0 %v915_v27 }
 0x3c0   :  { %v1084_v3 = vpop.f32.mrb[8].mxu0 }
 0x3c1   :  { %v1112_v28 = vadd.f32 %v1084_v3, %v993_v9  ;;  %v817_v29 = vpop.f32.mrb[9].mxu0 }
 0x3c2   :  { %v1113_v30 = vadd.f32 %v993_v9, %v817_v29  ;;  %v1085_v33 = vpop.f32.mrb[10].mxu0 }
 0x3c3   :  { %v838_v35 = vmax.f32 %v1112_v28, 0.0  ;;  %v1114_v36 = vadd.f32 %v1085_v33, %v993_v9  ;;  %v820_v38 = vpop.f32.mrb[11].mxu0 }
 0x3c4   :  { %v836_v39 = vmax.f32 %v1113_v30, 0.0  ;;  %v1115_v40 = vadd.f32 %v993_v9, %v820_v38 }
 0x3c5   :  { %v842_v41 = vadd.f32 %v838_v35, %v1362_v31  ;;  %v839_v13 = vmax.f32 %v1114_v36, 0.0 }
 0x3c6   :  { %v840_v42 = vadd.f32 %v836_v39, %v1364_v32  ;;  %v837_v43 = vmax.f32 %v1115_v40, 0.0 }
 0x3c7   :  { %v843_v44 = vadd.f32 %v839_v13, %v1366_v34  ;;  %v846_v16 = vmax.f32 %v842_v41, 0.0 }
 0x3c8   :  { %v841_v45 = vadd.f32 %v837_v43, %v1375_v37  ;;  %v844_v46 = vmax.f32 %v840_v42, 0.0  ;;  %v998_v37 = vld [vmem:[%s1474_s16] ss:$0 sm:$0xff] }
 0x3c9   :  { %v847_v20 = vmax.f32 %v843_v44, 0.0 }
 0x3ca   :  { %v845_v47 = vmax.f32 %v841_v45, 0.0 }
 0x3cb   :  { %v857_v48 = vpack.c.bf16 %v847_v20, %v846_v16 }
 0x3cc   :  { %v856_v49 = vpack.c.bf16 %v845_v47, %v844_v46 }
 0x3ce   :  { %1087 = vmatpush3.bf16.msra.mxu1 %v856_v49 }
 0x3cf   :  { %1088 = vmatprep.subr.bf16.mxu1 %v1168_v25 }
 0x3d2   :  { %1089 = vmatpush3.bf16.msra.mxu1 %v857_v48 }
 0x3d5   :  { %1091 = vmatmul.mubr.msk.bf16.vlgmr.msra.gmra.mrb[8].mxu1 %vm858_vm11, %v855_v51 }
 0x4a8   :  { %v896_v31 = vpop.f32.mrb[8].mxu1 }
 0x4a9   :  { %v902_v32 = vpack.c.bf16 %v896_v31, %v896_v31  ;;  %v1092_v52 = vpop.f32.mrb[9].mxu1 }
 0x4aa   :  { %v899_v34 = vpop.f32.mrb[10].mxu1 }
 0x4ab   :  { %v1093_v53 = vpop.f32.mrb[11].mxu1  ;;  %1097 = vmatmul.mubr.msk.bf16.vlgmr.msra.gmra.mrb[12].mxu0 %vm307_vm6, %v902_v32 }
 0x57e   :  { %v951_v54 = vpop.f32.mrb[12].mxu0 }
 0x57f   :  { %v952_v55 = vadd.f32 %v998_v37, %v951_v54  ;;  %v1098_v56 = vpop.f32.mrb[13].mxu0 }
 0x580   :  { %v954_v57 = vpop.f32.mrb[14].mxu0 }
 0x581   :  { %v1099_v58 = vpop.f32.mrb[15].mxu0  ;;  %958 = vst.msk [vmem:[#allocation2] sm:$0x3] %vm957_vm12, %v952_v55 }
 0x582   :  { %1155 = shalt.err (!%p1152_p4)
}
 0x583   :  { %s1156_s16 = scalar_lea.hbm %s1475_s17, 32 }
 0x584   :  { %p1157_p5 = scmp.ne.s32.totalorder %s1475_s17, %s1156_s16  ;;  %p1160_p6 = scmp.lt.u32.totalorder %s1156_s16, %s1475_s17 }
 0x586   :  { %p1162_p7 = pnand %p1160_p6, %p1157_p5 }
 0x588   :  { %1165 = shalt.err (!%p1162_p7)
}
 0x589   :  { %968 = dma.vmem_to_hbm [thread:$0]  %s966_s2, 32, %s1475_s17, [#allocation3]  }
 0x58a   :  { %1166 = dma.done.wait [#allocation3], 32  }
 0x58b   :  { %1167 = vsyncadd [#allocation3], 4294967264 }
 0x58c   :  { %972 = vsyncpa [#allocation3], 1 }

</bundles_post_ra>
